<compile_context>
chip_gen: v7x
topology: tpu7x:2x2x1
jax: 0.10.0
libtpu: 0.0.40
codegen_flags: <defaults>
</compile_context>

<pallas_src>
import jax
import jax.numpy as jnp
from jax.experimental import pallas as pl
from jax.experimental.pallas import tpu as pltpu

EPS = 1e-20
LANE_MAX = 4096                 # cap on lane width (multiple of 128)
TARGET_TILE_BYTES = 4 << 20     # ~4 MiB per operand tile (v7x-safe)


def _nc_bias_kernel_bias(offset_ref, dcd_ref, cd_ref, d_ref):
    # Elementwise hot path; divide runs on EUP/VPU and is hidden under DMA.
    d_ref[...] = dcd_ref[...] / (cd_ref[...] + EPS) + offset_ref[0]


def _nc_bias_kernel_nobias(dcd_ref, cd_ref, d_ref):
    d_ref[...] = dcd_ref[...] / (cd_ref[...] + EPS)


def _choose_lane(n):
    """Largest multiple of 128 that divides n, capped at LANE_MAX (0 if none)."""
    start = (min(LANE_MAX, n) // 128) * 128
    for cand in range(start, 0, -128):
        if n % cand == 0:
            return cand
    return 0


def nc_bias_forward(x, offset=None, use_bias=True):
    """x: (B, C, H, W). Returns (d, cd), each (B//2, C, H, W)."""
    B, C, H, W = x.shape
    assert B % 2 == 0
    Bh = B // 2
    n = Bh * C * H * W                       # elements per half

    # Lane-dense 2-D layout of each half: (R, L).
    L = _choose_lane(n)
    if L == 0:
        L = W                                # fallback: keep original minor dim
    R = n // L

    # Row tile: ~TARGET_TILE_BYTES per operand tile, multiple of 8 sublanes.
    bytes_per_row = L * jnp.dtype(x.dtype).itemsize
    tile_r = max(1, TARGET_TILE_BYTES // bytes_per_row)
    if tile_r >= R:
        tile_r = R                           # single block spans the half (full-extent dim)
    else:
        tile_r = max(8, (tile_r // 8) * 8)

    grid = (pl.cdiv(R, tile_r),)

    # Single reshaped view of x: axis 0 index 0 = dcd half, 1 = cd half.
    x3 = x.reshape(2, R, L)

    blk = (1, tile_r, L)
    dcd_spec = pl.BlockSpec(blk, lambda i: (0, i, 0))
    cd_spec = pl.BlockSpec(blk, lambda i: (1, i, 0))
    out_spec = pl.BlockSpec(blk, lambda i: (0, i, 0))
    out_shape = jax.ShapeDtypeStruct((1, R, L), x.dtype)

    compiler_params = pltpu.CompilerParams(dimension_semantics=("parallel",))

    if use_bias:
        off = offset.reshape((1,)).astype(x.dtype)
        d_flat = pl.pallas_call(
            _nc_bias_kernel_bias,
            out_shape=out_shape,
            grid=grid,
            in_specs=[pl.BlockSpec(memory_space=pltpu.MemorySpace.SMEM),  # offset scalar
                      dcd_spec, cd_spec],
            out_specs=out_spec,
            compiler_params=compiler_params,
        )(off, x3, x3)
    else:
        d_flat = pl.pallas_call(
            _nc_bias_kernel_nobias,
            out_shape=out_shape,
            grid=grid,
            in_specs=[dcd_spec, cd_spec],
            out_specs=out_spec,
            compiler_params=compiler_params,
        )(x3, x3)

    d = d_flat.reshape(Bh, C, H, W)
    cd = x[Bh:]                              # pass-through output: no extra HBM write
    return d, cd


if __name__ == "__main__":
    # Deterministic parameter init mirroring the module: offset = zeros(1).
    offset = jnp.zeros((1,), jnp.float32)

    key = jax.random.PRNGKey(0)
    B, C, H, W = 2, 4, 16, 16
    x = jax.random.uniform(key, (B, C, H, W), jnp.float32, minval=0.1, maxval=1.0)

    Bh = B // 2
    dcd_ref = x[:Bh]
    cd_ref = x[Bh:]

    ok = True

    # use_bias=True with the module's zero-initialized offset.
    d, cd = nc_bias_forward(x, offset, use_bias=True)
    jax.block_until_ready((d, cd))
    d_expect = dcd_ref / (cd_ref + EPS) + offset[0]
    ok &= d.shape == (Bh, C, H, W) and cd.shape == (Bh, C, H, W)
    ok &= bool(jnp.allclose(d, d_expect, rtol=1e-6, atol=1e-6))
    ok &= bool(jnp.allclose(cd, cd_ref))

    # Nonzero offset to exercise the bias add path.
    offset_nz = jnp.full((1,), 0.5, jnp.float32)
    d2, cd2 = nc_bias_forward(x, offset_nz, use_bias=True)
    jax.block_until_ready((d2, cd2))
    ok &= bool(jnp.allclose(d2, dcd_ref / (cd_ref + EPS) + 0.5, rtol=1e-6, atol=1e-6))

    # use_bias=False path.
    d3, cd3 = nc_bias_forward(x, None, use_bias=False)
    jax.block_until_ready((d3, cd3))
    ok &= bool(jnp.allclose(d3, dcd_ref / (cd_ref + EPS), rtol=1e-6, atol=1e-6))
    ok &= bool(jnp.allclose(cd3, cd_ref))

    assert ok
    print("KERNEL_OK")
</pallas_src>

<mosaic_0001>
module attributes {stable_mosaic.version = 11 : i64} {
  func.func @_nc_bias_kernel_bias(%arg0: i32, %arg1: memref<1xf32, #tpu.memory_space<smem>>, %arg2: memref<1x1x1024xf32, #tpu.memory_space<vmem>>, %arg3: memref<1x1x1024xf32, #tpu.memory_space<vmem>>, %arg4: memref<1x1x1024xf32, #tpu.memory_space<vmem>>) attributes {dimension_semantics = [#tpu.dimension_semantics<parallel>], iteration_bounds = array<i64: 1>, scalar_prefetch = 0 : i64, scratch_operands = 0 : i64, tpu.core_type = #tpu.core_type<tc>, window_params = [{transform_indices = @transform_0, window_bounds = array<i64: 1>}, {transform_indices = @transform_1, window_bounds = array<i64: 1, 1, 1024>}, {transform_indices = @transform_2, window_bounds = array<i64: 1, 1, 1024>}, {transform_indices = @transform_3, window_bounds = array<i64: 1, 1, 1024>}]} {
    %c0 = arith.constant 0 : index
    %c0_0 = arith.constant 0 : index
    %c0_1 = arith.constant 0 : index
    %0 = vector.load %arg2[%c0, %c0_0, %c0_1] : memref<1x1x1024xf32, #tpu.memory_space<vmem>>, vector<1x1x1024xf32>
    %c0_2 = arith.constant 0 : index
    %c0_3 = arith.constant 0 : index
    %c0_4 = arith.constant 0 : index
    %1 = vector.load %arg3[%c0_2, %c0_3, %c0_4] : memref<1x1x1024xf32, #tpu.memory_space<vmem>>, vector<1x1x1024xf32>
    %cst = arith.constant 9.99999968E-21 : f32
    %2 = vector.broadcast %cst : f32 to vector<1x1x1024xf32>
    %3 = arith.addf %1, %2 : vector<1x1x1024xf32>
    %4 = arith.divf %0, %3 : vector<1x1x1024xf32>
    %c0_5 = arith.constant 0 : index
    %5 = memref.load %arg1[%c0_5] : memref<1xf32, #tpu.memory_space<smem>>
    %6 = vector.broadcast %5 : f32 to vector<1x1x1024xf32>
    %7 = arith.addf %4, %6 : vector<1x1x1024xf32>
    %c0_6 = arith.constant 0 : index
    %c0_7 = arith.constant 0 : index
    %c0_8 = arith.constant 0 : index
    %8 = vector.load %arg4[%c0_6, %c0_7, %c0_8] : memref<1x1x1024xf32, #tpu.memory_space<vmem>>, vector<1x1x1024xf32>
    tpu.vector_store %arg4[%c0_6, %c0_7, %c0_8], %7 {strides = array<i32>} : memref<1x1x1024xf32, #tpu.memory_space<vmem>>, vector<1x1x1024xf32>,
    return
  }
  func.func @transform_0(%arg0: i32) -> i32 {
    %c0_i32 = arith.constant 0 : i32
    %c0_i32_0 = arith.constant 0 : i32
    return %c0_i32 : i32
  }
  func.func @transform_1(%arg0: i32) -> (i32, i32, i32) {
    %c0_i32 = arith.constant 0 : i32
    %c0_i32_0 = arith.constant 0 : i32
    %c0_i32_1 = arith.constant 0 : i32
    return %c0_i32, %arg0, %c0_i32_0 : i32, i32, i32
  }
  func.func @transform_2(%arg0: i32) -> (i32, i32, i32) {
    %c1_i32 = arith.constant 1 : i32
    %c0_i32 = arith.constant 0 : i32
    %c0_i32_0 = arith.constant 0 : i32
    return %c1_i32, %arg0, %c0_i32 : i32, i32, i32
  }
  func.func @transform_3(%arg0: i32) -> (i32, i32, i32) {
    %c0_i32 = arith.constant 0 : i32
    %c0_i32_0 = arith.constant 0 : i32
    %c0_i32_1 = arith.constant 0 : i32
    return %c0_i32, %arg0, %c0_i32_0 : i32, i32, i32
  }
}

</mosaic_0001>

<bundles_post_ra>
// kernel: tpu_custom_call.1
= control target key start
LH: loop header
LB: loop body
LE: loop exit
PB: predicated region body
PF: predicated region fallthrough
CT: control target
= control target key end

     0   :  { %9 = vsyncpa [#allocation4], 0  ;;  %s214_s0 = inlined_call_operand.<no memory space> [shape: f32[1], index: 0, kind: input, shape index: {}]   ;;  %s215_s1 = inlined_call_operand.hbm [shape: f32[2,1,1024], index: 1, kind: input, shape index: {}]   ;;  %s216_s2 = inlined_call_operand.hbm [shape: f32[2,1,1024], index: 2, kind: input, shape index: {}]   ;;  %s217_s3 = inlined_call_operand.hbm [shape: f32[1,1,1024], index: 3, kind: output, shape index: {}]  }
   0x1   :  { %10 = vsyncpa [#allocation7], 0 }
   0x2   :  { %11 = vsyncpa [#allocation5], 0  ;;  %s172_s14 = scalar_lea.hbm %s216_s2, 128  ;;  %s146_s15 = smov [#allocation3]  }
   0x3   :  { %s20_s16 = sshll.u32 %s146_s15, 4  ;;  %s147_s17 = smov [#allocation6]   ;;  %s21_s16 = int_to_ptr.vmem [resolvable:$true] %s20_s16 }
   0x4   :  { %s31_s18 = sshll.u32 %s147_s17, 4  ;;  %s71_s21 = scalar_lea.hbm %s215_s1, 128  ;;  %s32_s18 = int_to_ptr.vmem [resolvable:$true] %s31_s18 }
   0x5   :  { %p72_p0 = scmp.ne.s32.totalorder %s215_s1, %s71_s21  ;;  %s73_s26 = scalar_lea.hbm %s215_s1, 256 }
   0x6   :  { %p74_p1 = scmp.lt.u32.totalorder %s73_s26, %s71_s21  ;;  %p75_p2 = scmp.lt.u32.totalorder %s71_s21, %s215_s1 }
   0x8   :  { %p76_p3 = por %p75_p2, %p74_p1 }
   0xa   :  { %p77_p4 = pnand %p76_p3, %p72_p0 }
   0xc   :  { %80 = shalt.err (!%p77_p4)
}
   0xd   :  { %s81_s29 = scalar_lea.vmem %s21_s16, 128  ;;  %p86_p6 = scmp.lt.s32.totalorder %s21_s16, %s21_s16 }
   0xe   :  { %p82_p5 = scmp.ne.s32.totalorder %s21_s16, %s81_s29  ;;  %p87_p7 = scmp.lt.s32.totalorder %s81_s29, %s81_s29 }
  0x10   :  { %p88_p8 = por %p87_p7, %p86_p6 }
  0x12   :  { %p89_p9 = pnand %p88_p8, %p82_p5 }
  0x14   :  { %92 = shalt.err (!%p89_p9)
}
  0x15   :  { %23 = dma.hbm_to_vmem [thread:$0]  %s215_s1, 128, %s21_s16, [#allocation4]  }
  0x16   :  { %s117_s7 = scalar_lea.hbm %s216_s2, 256  ;;  %p96_p11 = scmp.lt.u32.totalorder %s172_s14, %s216_s2 }
  0x17   :  { %p94_p10 = scmp.ne.s32.totalorder %s172_s14, %s117_s7  ;;  %p97_p12 = scmp.lt.u32.totalorder %s117_s7, %s117_s7 }
  0x18   :  { %p99_p0 = scmp.lt.u32.totalorder %s117_s7, %s172_s14 }
  0x19   :  { %p98_p13 = por %p97_p12, %p96_p11 }
  0x1b   :  { %p100_p1 = por %p99_p0, %p98_p13 }
  0x1d   :  { %p101_p2 = pnand %p100_p1, %p94_p10 }
  0x1f   :  { %104 = shalt.err (!%p101_p2)
}
  0x20   :  { %s105_s10 = scalar_lea.vmem %s32_s18, 128  ;;  %p110_p4 = scmp.lt.s32.totalorder %s32_s18, %s32_s18 }
  0x21   :  { %p106_p3 = scmp.ne.s32.totalorder %s32_s18, %s105_s10  ;;  %p111_p5 = scmp.lt.s32.totalorder %s105_s10, %s105_s10 }
  0x23   :  { %p112_p6 = por %p111_p5, %p110_p4 }
  0x25   :  { %p113_p7 = pnand %p112_p6, %p106_p3 }
  0x27   :  { %116 = shalt.err (!%p113_p7)
}
  0x28   :  { %34 = dma.hbm_to_vmem [thread:$0]  %s172_s14, 128, %s32_s18, [#allocation7]  }
  0x29   :  { %140 = dma.done.wait [#allocation4], 128  }
  0x2a   :  { %141 = vsyncadd [#allocation4], 4294967168 }
  0x2b   :  { %142 = dma.done.wait [#allocation7], 128  }
  0x2c   :  { %143 = vsyncadd [#allocation7], 4294967168  ;;  %v42_v0 = vld [vmem:[#allocation6] sm:$0xff]  ;;  %v41_v2 = vld [vmem:[#allocation3] sm:$0xff]  ;;  %v47_v4 = vstv %s214_s0  ;;  %s148_s11 = smov [#allocation8]  }
  0x2d   :  { %v43_v1 = vadd.f32 1e-20, %v42_v0  ;;  %s56_s12 = sshll.u32 %s148_s11, 4  ;;  %s57_s12 = int_to_ptr.vmem [resolvable:$true] %s56_s12 }
  0x2e   :  { %s118_s13 = scalar_lea.vmem %s57_s12, 128  ;;  %p123_p9 = scmp.lt.s32.totalorder %s57_s12, %s57_s12 }
  0x2f   :  { %69 = vrcp.f32 %v43_v1  ;;  %p119_p8 = scmp.ne.s32.totalorder %s57_s12, %s118_s13  ;;  %p124_p10 = scmp.lt.s32.totalorder %s118_s13, %s118_s13 }
  0x31   :  { %p125_p11 = por %p124_p10, %p123_p9 }
  0x33   :  { %p126_p12 = pnand %p125_p11, %p119_p8 }
  0x39   :  { %v70_v3 = vpop.eup %69 }
  0x3a   :  { %v45_v5 = vmul.f32 %v70_v3, %v41_v2 }
  0x3c   :  { %v48_v6 = vadd.f32 %v47_v4, %v45_v5 }
  0x3e   :  { %49 = vst [vmem:[#allocation8] sm:$0xff] %v48_v6 }
  0x3f   :  { %129 = shalt.err (!%p126_p12)
}
  0x40   :  { %s130_s16 = scalar_lea.hbm %s217_s3, 128 }
  0x41   :  { %p131_p13 = scmp.ne.s32.totalorder %s217_s3, %s130_s16  ;;  %p134_p0 = scmp.lt.u32.totalorder %s130_s16, %s217_s3 }
  0x43   :  { %p136_p1 = pnand %p134_p0, %p131_p13 }
  0x45   :  { %139 = shalt.err (!%p136_p1)
}
  0x46   :  { %59 = dma.vmem_to_hbm [thread:$0]  %s57_s12, 128, %s217_s3, [#allocation5]  }
  0x47   :  { %144 = dma.done.wait [#allocation5], 128  }
  0x48   :  { %145 = vsyncadd [#allocation5], 4294967168 }
  0x49   :  { %63 = vsyncpa [#allocation4], 1 }
  0x4a   :  { %64 = vsyncpa [#allocation7], 1 }
  0x4b   :  { %65 = vsyncpa [#allocation5], 1 }

</bundles_post_ra>
